<compile_context>
chip_gen: v7x
topology: tpu7x:2x2x1
jax: 0.10.0
libtpu: 0.0.40
codegen_flags: <defaults>
</compile_context>

<pallas_src>
import functools

import jax
import jax.numpy as jnp
from jax.experimental import pallas as pl
from jax.experimental.pallas import tpu as pltpu

EPS = 1e-5
LANE = 128


# ---------------------------------------------------------------------------
# Kernels
# ---------------------------------------------------------------------------
def _pool_kernel(x_ref, part_ref, *, hw, hw_blk, n_inner, mask_needed):
    """Accumulate partial spatial sums of x into the resident (1, B, c_blk) block.

    The trailing-axis jnp.sum lowers to VPU adds across lane-groups plus a single
    cross-lane XLU pass per (B, c_blk) vreg row, so it hides under the HBM stream
    on all generations.
    """
    h = pl.program_id(2)

    @pl.when(h == 0)
    def _():
        part_ref[...] = jnp.zeros_like(part_ref)

    x = x_ref[...].astype(jnp.float32)
    if mask_needed:
        # Ragged tail (and clamped duplicate blocks): zero lanes past HW before
        # summing.  `blk` is the UNCLAMPED global spatial-block index.
        blk = pl.program_id(0) * n_inner + h
        lane = jax.lax.broadcasted_iota(jnp.int32, (1, 1, hw_blk), 2)
        x = jnp.where(blk * hw_blk + lane < hw, x, 0.0)

    part_ref[...] += jnp.sum(x, axis=-1)[None, :, :]


def _bcast_mlp_kernel(part_ref, w0_ref, b0_ref, w1_ref, b1_ref, w2_ref, b2_ref,
                      wl_ref, bl_ref, o_ref, *, inv_hw):
    """Finish the mean, run (fc+bn+relu)x3 -> last_fc, broadcast along spatial.

    The MLP is a few hundred FLOPs, so recomputing it per grid step is free and
    avoids any cross-step scratch dependence (safe under megacore sharding).
    """
    pooled = jnp.sum(part_ref[...], axis=0) * inv_hw          # (B, C) mean

    def fc_relu(h, w_ref, b_ref):
        h = jnp.dot(h, w_ref[...], preferred_element_type=jnp.float32) + b_ref[...]
        return jnp.maximum(h, 0.0)

    h = fc_relu(pooled, w0_ref, b0_ref)
    h = fc_relu(h, w1_ref, b1_ref)
    h = fc_relu(h, w2_ref, b2_ref)
    att = (jnp.dot(h, wl_ref[...], preferred_element_type=jnp.float32)
           + bl_ref[...])                                      # (B, c_blk)

    # unsqueeze(-1).unsqueeze(-1).expand_as(x): broadcast along the lane axis.
    o_ref[...] = jnp.broadcast_to(att.astype(o_ref.dtype)[:, :, None], o_ref.shape)


# ---------------------------------------------------------------------------
# Host-side helpers
# ---------------------------------------------------------------------------
def _vmem_capacity_bytes():
    cap = 64 * 1024 * 1024            # conservative fallback = v7x per-TC VMEM
    try:
        cap = int(getattr(pltpu.get_tpu_info(), "vmem_capacity_bytes", cap))
    except Exception:
        pass
    return cap


def _pick_c_block(C, max_c=256):
    # c_blk is the 2nd-minor dim of the x tiles and the minor dim of the pooled /
    # att blocks; use full C unless C is a large multiple of 128.
    if C <= max_c or C % LANE != 0:
        return C
    for cand in range(max_c, LANE - 1, -LANE):
        if C % cand == 0:
            return cand
    return C


def _pick_hw_block(B, c_blk, HW, itemsize, max_tile_bytes):
    # Largest multiple of 128 <= HW that fits the per-tile byte budget.  No
    # divisibility requirement: the grid uses cdiv and the kernel masks the tail.
    if HW <= LANE:
        return HW
    lane_cap = max(LANE, (max_tile_bytes // (B * c_blk * itemsize)) // LANE * LANE)
    return int(min((HW // LANE) * LANE, lane_cap))


def _fold_bn(params, eps=EPS):
    """Fold eval-mode BatchNorm1d into the preceding Linear: 20 params -> 8."""
    folded = []
    for i in range(3):
        w, b, g, be, m, v = params[6 * i:6 * i + 6]
        s = g * jax.lax.rsqrt(v + eps)            # (1, dout)
        folded += [w * s, (b - m) * s + be]
    folded += [params[-2], params[-1]]            # last_fc untouched
    return tuple(folded)


# ---------------------------------------------------------------------------
# Public wrapper
# ---------------------------------------------------------------------------
def channel_attention(x, params, tile_bytes_cap=None):
    """x: (B, C, H, W); params: 20-tuple from init_params (raw fc + bn params)."""
    B, C, H, W = x.shape
    HW = H * W
    itemsize = jnp.dtype(x.dtype).itemsize
    fparams = _fold_bn(params)
    hid = fparams[0].shape[1]

    x3 = x.reshape(B, C, HW)

    # Generation-aware budgets (v5e/v6e: 128 MiB VMEM, v7x: 64 MiB per TC).
    vmem_cap = _vmem_capacity_bytes()
    vmem_limit = int(min(0.70 * vmem_cap, 100 * 1024 * 1024))
    max_tile_bytes = min(16 * 1024 * 1024, vmem_limit // 4)
    if tile_bytes_cap is not None:                # test hook for ragged paths
        max_tile_bytes = int(tile_bytes_cap)

    c_blk = _pick_c_block(C)
    hw_blk = _pick_hw_block(B, c_blk, HW, itemsize, max_tile_bytes)
    n_c = C // c_blk
    n_hw = pl.cdiv(HW, hw_blk)
    n_out = 2 if n_hw >= 2 else 1                 # >=2 parallel chunks for v7x
    n_inner = pl.cdiv(n_hw, n_out)
    mask_needed = (HW % hw_blk != 0) or (n_out * n_inner != n_hw)

    x_bytes = B * C * HW * itemsize

    # Phase 1: AdaptiveAvgPool2d(1) as a tiled, pipelined spatial sum-reduction
    # into per-outer-chunk partial sums (scaled by 1/HW in phase 2).
    def x_map(o, c, h):
        blk = o * n_inner + h
        # Clamp the (at most one) duplicate tail block; its contribution is
        # zeroed by the in-kernel mask.
        return (0, c, jnp.minimum(blk, n_hw - 1))

    partial = pl.pallas_call(
        functools.partial(_pool_kernel, hw=HW, hw_blk=hw_blk,
                          n_inner=n_inner, mask_needed=mask_needed),
        out_shape=jax.ShapeDtypeStruct((n_out, B, C), jnp.float32),
        grid=(n_out, n_c, n_inner),
        in_specs=[pl.BlockSpec((B, c_blk, hw_blk), x_map)],
        out_specs=pl.BlockSpec((1, B, c_blk), lambda o, c, h: (o, 0, c)),
        compiler_params=pltpu.CompilerParams(
            dimension_semantics=("parallel", "parallel", "arbitrary"),
            vmem_limit_bytes=vmem_limit),
        cost_estimate=pl.CostEstimate(
            flops=B * C * HW, transcendentals=0,
            bytes_accessed=x_bytes + n_out * B * C * 4),
    )(x3)

    # Phase 2 (fused MLP + broadcast): the partial sums and the folded weights are
    # whole-array blocks with constant index maps (DMA'd once, VMEM-resident);
    # wl/bl are blocked along C so each step only needs its output channel slab.
    const2 = lambda c, h: (0, 0)
    const3 = lambda c, h: (0, 0, 0)
    out3 = pl.pallas_call(
        functools.partial(_bcast_mlp_kernel, inv_hw=1.0 / float(HW)),
        out_shape=jax.ShapeDtypeStruct((B, C, HW), x.dtype),
        grid=(n_c, n_hw),
        in_specs=[
            pl.BlockSpec((n_out, B, C), const3),          # partial sums
            pl.BlockSpec((C, hid), const2),               # w0 (BN folded)
            pl.BlockSpec((1, hid), const2),               # b0
            pl.BlockSpec((hid, hid), const2),             # w1
            pl.BlockSpec((1, hid), const2),               # b1
            pl.BlockSpec((hid, hid), const2),             # w2
            pl.BlockSpec((1, hid), const2),               # b2
            pl.BlockSpec((hid, c_blk), lambda c, h: (0, c)),   # wl
            pl.BlockSpec((1, c_blk), lambda c, h: (0, c)),     # bl
        ],
        out_specs=pl.BlockSpec((B, c_blk, hw_blk), lambda c, h: (0, c, h)),
        compiler_params=pltpu.CompilerParams(
            dimension_semantics=("parallel", "parallel"),
            vmem_limit_bytes=vmem_limit),
        cost_estimate=pl.CostEstimate(
            flops=B * C * HW, transcendentals=0,
            bytes_accessed=x_bytes + n_out * B * C * 4),
    )(partial, *fparams)

    return out3.reshape(B, C, H, W)


# ---------------------------------------------------------------------------
# Parameter init + pure-JAX reference (for correctness checks)
# ---------------------------------------------------------------------------
def init_params(key, channel, reduction=16, num_layers=3):
    """Deterministic synthetic parameters matching the module's shapes.

    Linear weights are stored pre-transposed as (in, out).
    BN / bias vectors are stored as (1, dim) for clean 2D broadcasting.
    """
    hid = channel // reduction
    dims = [channel] + [hid] * num_layers + [channel]
    keys = jax.random.split(key, 4 * (len(dims) - 1))
    params = []
    ki = 0
    for i in range(len(dims) - 2):                 # three fc + bn blocks
        din, dout = dims[i], dims[i + 1]
        w = jax.random.normal(keys[ki], (din, dout), jnp.float32) * 0.1; ki += 1
        b = jax.random.normal(keys[ki], (1, dout), jnp.float32) * 0.1;   ki += 1
        gamma = 1.0 + 0.1 * jax.random.normal(keys[ki], (1, dout), jnp.float32); ki += 1
        beta = 0.1 * jax.random.normal(keys[ki], (1, dout), jnp.float32);        ki += 1
        rmean = jnp.zeros((1, dout), jnp.float32)
        rvar = jnp.ones((1, dout), jnp.float32)
        params += [w, b, gamma, beta, rmean, rvar]
    din, dout = dims[-2], dims[-1]                 # last_fc
    wl = jax.random.normal(keys[ki], (din, dout), jnp.float32) * 0.1; ki += 1
    bl = jax.random.normal(keys[ki], (1, dout), jnp.float32) * 0.1;   ki += 1
    params += [wl, bl]
    return tuple(params)


def channel_attention_ref(x, params):
    """Pure-JAX reference (unfolded eval-mode BN)."""
    B, C, H, W = x.shape
    pooled = jnp.mean(x.reshape(B, C, H * W), axis=-1)
    h = pooled
    for i in range(3):
        w, b, g, be, m, v = params[6 * i:6 * i + 6]
        h = h @ w + b
        h = (h - m) / jnp.sqrt(v + EPS) * g + be
        h = jnp.maximum(h, 0.0)
    wl, bl = params[-2:]
    att = h @ wl + bl
    return jnp.broadcast_to(att[:, :, None, None], (B, C, H, W))


if __name__ == "__main__":
    key = jax.random.PRNGKey(0)
    kx, kp = jax.random.split(key)

    # channel=64, reduction=16 -> hidden width 4 (module defaults).
    params = init_params(kp, 64, reduction=16, num_layers=3)
    fn = jax.jit(channel_attention, static_argnames=("tile_bytes_cap",))

    cases = [
        ((2, 64, 16, 16), None),       # HW = 256  -> single spatial tile
        ((2, 64, 48, 48), None),       # HW = 2304 -> large lane-dense tile
        ((2, 64, 20, 20), None),       # HW = 400  -> ragged tail (masked in-kernel)
        ((2, 64, 5, 7), None),         # HW = 35   -> sub-lane spatial axis
        ((2, 64, 17, 20), 64 * 1024),  # small tile cap -> odd n_hw, duplicate block
    ]
    for (B, C, H, W), cap in cases:
        x = jax.random.normal(jax.random.fold_in(kx, H * W), (B, C, H, W),
                              jnp.float32)
        out = jax.block_until_ready(fn(x, params, tile_bytes_cap=cap))
        ref = jax.block_until_ready(channel_attention_ref(x, params))
        assert out.shape == (B, C, H, W)
        assert jnp.allclose(out, ref, atol=1e-4, rtol=1e-4), (B, C, H, W)

    print("KERNEL_OK")
</pallas_src>

<mosaic_0001>
module attributes {stable_mosaic.version = 11 : i64} {
  func.func @_bcast_mlp_kernel(%arg0: i32, %arg1: i32, %arg2: memref<1x2x64xf32, #tpu.memory_space<vmem>>, %arg3: memref<64x4xf32, #tpu.memory_space<vmem>>, %arg4: memref<1x4xf32, #tpu.memory_space<vmem>>, %arg5: memref<4x4xf32, #tpu.memory_space<vmem>>, %arg6: memref<1x4xf32, #tpu.memory_space<vmem>>, %arg7: memref<4x4xf32, #tpu.memory_space<vmem>>, %arg8: memref<1x4xf32, #tpu.memory_space<vmem>>, %arg9: memref<4x64xf32, #tpu.memory_space<vmem>>, %arg10: memref<1x64xf32, #tpu.memory_space<vmem>>, %arg11: memref<2x64x256xf32, #tpu.memory_space<vmem>>) attributes {dimension_semantics = [#tpu.dimension_semantics<parallel>, #tpu.dimension_semantics<parallel>], iteration_bounds = array<i64: 1, 1>, scalar_prefetch = 0 : i64, scratch_operands = 0 : i64, tpu.core_type = #tpu.core_type<tc>, window_params = [{pipeline_mode = #tpu.pipeline_mode<synchronous>, transform_indices = @transform_0, window_bounds = array<i64: 1, 2, 64>}, {pipeline_mode = #tpu.pipeline_mode<synchronous>, transform_indices = @transform_1, window_bounds = array<i64: 64, 4>}, {pipeline_mode = #tpu.pipeline_mode<synchronous>, transform_indices = @transform_2, window_bounds = array<i64: 1, 4>}, {pipeline_mode = #tpu.pipeline_mode<synchronous>, transform_indices = @transform_3, window_bounds = array<i64: 4, 4>}, {pipeline_mode = #tpu.pipeline_mode<synchronous>, transform_indices = @transform_4, window_bounds = array<i64: 1, 4>}, {pipeline_mode = #tpu.pipeline_mode<synchronous>, transform_indices = @transform_5, window_bounds = array<i64: 4, 4>}, {pipeline_mode = #tpu.pipeline_mode<synchronous>, transform_indices = @transform_6, window_bounds = array<i64: 1, 4>}, {transform_indices = @transform_7, window_bounds = array<i64: 4, 64>}, {transform_indices = @transform_8, window_bounds = array<i64: 1, 64>}, {transform_indices = @transform_9, window_bounds = array<i64: 2, 64, 256>}]} {
    %c0 = arith.constant 0 : index
    %c0_0 = arith.constant 0 : index
    %c0_1 = arith.constant 0 : index
    %0 = vector.load %arg2[%c0, %c0_0, %c0_1] : memref<1x2x64xf32, #tpu.memory_space<vmem>>, vector<1x2x64xf32>
    %cst = arith.constant dense<0.000000e+00> : vector<2x64xf32>
    %1 = vector.multi_reduction <add>, %0, %cst [0] : vector<1x2x64xf32> to vector<2x64xf32>
    %cst_2 = arith.constant 3.906250e-03 : f32
    %2 = vector.broadcast %cst_2 : f32 to vector<2x64xf32>
    %3 = arith.mulf %1, %2 : vector<2x64xf32>
    %c0_3 = arith.constant 0 : index
    %c0_4 = arith.constant 0 : index
    %4 = vector.load %arg3[%c0_3, %c0_4] : memref<64x4xf32, #tpu.memory_space<vmem>>, vector<64x4xf32>
    %cst_5 = arith.constant dense<0.000000e+00> : vector<2x4xf32>
    %5 = tpu.matmul %3, %4, %cst_5 {dimension_numbers = #tpu.dot_dimension_numbers<[1], [0], [0], [1], [0, 0, 1, 1], [], []>} : vector<2x64xf32>, vector<64x4xf32>, vector<2x4xf32> -> vector<2x4xf32>
    %c0_6 = arith.constant 0 : index
    %c0_7 = arith.constant 0 : index
    %6 = vector.load %arg4[%c0_6, %c0_7] : memref<1x4xf32, #tpu.memory_space<vmem>>, vector<1x4xf32>
    %7 = vector.broadcast %6 : vector<1x4xf32> to vector<2x4xf32>
    %8 = arith.addf %5, %7 : vector<2x4xf32>
    %cst_8 = arith.constant 0.000000e+00 : f32
    %9 = vector.broadcast %cst_8 : f32 to vector<2x4xf32>
    %10 = arith.maximumf %8, %9 : vector<2x4xf32>
    %c0_9 = arith.constant 0 : index
    %c0_10 = arith.constant 0 : index
    %11 = vector.load %arg5[%c0_9, %c0_10] : memref<4x4xf32, #tpu.memory_space<vmem>>, vector<4x4xf32>
    %cst_11 = arith.constant dense<0.000000e+00> : vector<2x4xf32>
    %12 = tpu.matmul %10, %11, %cst_11 {dimension_numbers = #tpu.dot_dimension_numbers<[1], [0], [0], [1], [0, 0, 1, 1], [], []>} : vector<2x4xf32>, vector<4x4xf32>, vector<2x4xf32> -> vector<2x4xf32>
    %c0_12 = arith.constant 0 : index
    %c0_13 = arith.constant 0 : index
    %13 = vector.load %arg6[%c0_12, %c0_13] : memref<1x4xf32, #tpu.memory_space<vmem>>, vector<1x4xf32>
    %14 = vector.broadcast %13 : vector<1x4xf32> to vector<2x4xf32>
    %15 = arith.addf %12, %14 : vector<2x4xf32>
    %cst_14 = arith.constant 0.000000e+00 : f32
    %16 = vector.broadcast %cst_14 : f32 to vector<2x4xf32>
    %17 = arith.maximumf %15, %16 : vector<2x4xf32>
    %c0_15 = arith.constant 0 : index
    %c0_16 = arith.constant 0 : index
    %18 = vector.load %arg7[%c0_15, %c0_16] : memref<4x4xf32, #tpu.memory_space<vmem>>, vector<4x4xf32>
    %cst_17 = arith.constant dense<0.000000e+00> : vector<2x4xf32>
    %19 = tpu.matmul %17, %18, %cst_17 {dimension_numbers = #tpu.dot_dimension_numbers<[1], [0], [0], [1], [0, 0, 1, 1], [], []>} : vector<2x4xf32>, vector<4x4xf32>, vector<2x4xf32> -> vector<2x4xf32>
    %c0_18 = arith.constant 0 : index
    %c0_19 = arith.constant 0 : index
    %20 = vector.load %arg8[%c0_18, %c0_19] : memref<1x4xf32, #tpu.memory_space<vmem>>, vector<1x4xf32>
    %21 = vector.broadcast %20 : vector<1x4xf32> to vector<2x4xf32>
    %22 = arith.addf %19, %21 : vector<2x4xf32>
    %cst_20 = arith.constant 0.000000e+00 : f32
    %23 = vector.broadcast %cst_20 : f32 to vector<2x4xf32>
    %24 = arith.maximumf %22, %23 : vector<2x4xf32>
    %c0_21 = arith.constant 0 : index
    %c0_22 = arith.constant 0 : index
    %25 = vector.load %arg9[%c0_21, %c0_22] : memref<4x64xf32, #tpu.memory_space<vmem>>, vector<4x64xf32>
    %cst_23 = arith.constant dense<0.000000e+00> : vector<2x64xf32>
    %26 = tpu.matmul %24, %25, %cst_23 {dimension_numbers = #tpu.dot_dimension_numbers<[1], [0], [0], [1], [0, 0, 1, 1], [], []>} : vector<2x4xf32>, vector<4x64xf32>, vector<2x64xf32> -> vector<2x64xf32>
    %c0_24 = arith.constant 0 : index
    %c0_25 = arith.constant 0 : index
    %27 = vector.load %arg10[%c0_24, %c0_25] : memref<1x64xf32, #tpu.memory_space<vmem>>, vector<1x64xf32>
    %28 = vector.broadcast %27 : vector<1x64xf32> to vector<2x64xf32>
    %29 = arith.addf %26, %28 : vector<2x64xf32>
    %30 = vector.shape_cast %29 : vector<2x64xf32> to vector<2x64x1xf32>
    %31 = vector.shape_cast %30 : vector<2x64x1xf32> to vector<2x64x1xf32>
    %32 = vector.broadcast %31 : vector<2x64x1xf32> to vector<2x64x256xf32>
    %c0_26 = arith.constant 0 : index
    %c0_27 = arith.constant 0 : index
    %c0_28 = arith.constant 0 : index
    %33 = vector.load %arg11[%c0_26, %c0_27, %c0_28] : memref<2x64x256xf32, #tpu.memory_space<vmem>>, vector<2x64x256xf32>
    tpu.vector_store %arg11[%c0_26, %c0_27, %c0_28], %32 {strides = array<i32>} : memref<2x64x256xf32, #tpu.memory_space<vmem>>, vector<2x64x256xf32>,
    return
  }
  func.func @transform_0(%arg0: i32, %arg1: i32) -> (i32, i32, i32) {
    %c0_i32 = arith.constant 0 : i32
    %c0_i32_0 = arith.constant 0 : i32
    %c0_i32_1 = arith.constant 0 : i32
    %c0_i32_2 = arith.constant 0 : i32
    return %c0_i32, %c0_i32_0, %c0_i32_1 : i32, i32, i32
  }
  func.func @transform_1(%arg0: i32, %arg1: i32) -> (i32, i32) {
    %c0_i32 = arith.constant 0 : i32
    %c0_i32_0 = arith.constant 0 : i32
    %c0_i32_1 = arith.constant 0 : i32
    return %c0_i32, %c0_i32_0 : i32, i32
  }
  func.func @transform_2(%arg0: i32, %arg1: i32) -> (i32, i32) {
    %c0_i32 = arith.constant 0 : i32
    %c0_i32_0 = arith.constant 0 : i32
    %c0_i32_1 = arith.constant 0 : i32
    return %c0_i32, %c0_i32_0 : i32, i32
  }
  func.func @transform_3(%arg0: i32, %arg1: i32) -> (i32, i32) {
    %c0_i32 = arith.constant 0 : i32
    %c0_i32_0 = arith.constant 0 : i32
    %c0_i32_1 = arith.constant 0 : i32
    return %c0_i32, %c0_i32_0 : i32, i32
  }
  func.func @transform_4(%arg0: i32, %arg1: i32) -> (i32, i32) {
    %c0_i32 = arith.constant 0 : i32
    %c0_i32_0 = arith.constant 0 : i32
    %c0_i32_1 = arith.constant 0 : i32
    return %c0_i32, %c0_i32_0 : i32, i32
  }
  func.func @transform_5(%arg0: i32, %arg1: i32) -> (i32, i32) {
    %c0_i32 = arith.constant 0 : i32
    %c0_i32_0 = arith.constant 0 : i32
    %c0_i32_1 = arith.constant 0 : i32
    return %c0_i32, %c0_i32_0 : i32, i32
  }
  func.func @transform_6(%arg0: i32, %arg1: i32) -> (i32, i32) {
    %c0_i32 = arith.constant 0 : i32
    %c0_i32_0 = arith.constant 0 : i32
    %c0_i32_1 = arith.constant 0 : i32
    return %c0_i32, %c0_i32_0 : i32, i32
  }
  func.func @transform_7(%arg0: i32, %arg1: i32) -> (i32, i32) {
    %c0_i32 = arith.constant 0 : i32
    %c0_i32_0 = arith.constant 0 : i32
    return %c0_i32, %arg0 : i32, i32
  }
  func.func @transform_8(%arg0: i32, %arg1: i32) -> (i32, i32) {
    %c0_i32 = arith.constant 0 : i32
    %c0_i32_0 = arith.constant 0 : i32
    return %c0_i32, %arg0 : i32, i32
  }
  func.func @transform_9(%arg0: i32, %arg1: i32) -> (i32, i32, i32) {
    %c0_i32 = arith.constant 0 : i32
    %c0_i32_0 = arith.constant 0 : i32
    return %c0_i32, %arg0, %arg1 : i32, i32, i32
  }
}

module attributes {stable_mosaic.version = 11 : i64} {
  func.func @_pool_kernel(%arg0: i32, %arg1: i32, %arg2: i32, %arg3: memref<2x64x256xf32, #tpu.memory_space<vmem>>, %arg4: memref<1x2x64xf32, #tpu.memory_space<vmem>>) attributes {dimension_semantics = [#tpu.dimension_semantics<parallel>, #tpu.dimension_semantics<parallel>, #tpu.dimension_semantics<arbitrary>], iteration_bounds = array<i64: 1, 1, 1>, scalar_prefetch = 0 : i64, scratch_operands = 0 : i64, tpu.core_type = #tpu.core_type<tc>, window_params = [{transform_indices = @transform_0, window_bounds = array<i64: 2, 64, 256>}, {transform_indices = @transform_1, window_bounds = array<i64: 1, 2, 64>}]} {
    %c0_i32 = arith.constant 0 : i32
    %0 = arith.cmpi eq, %arg2, %c0_i32 : i32
    %1 = arith.extui %0 : i1 to i32
    %c0_i32_0 = arith.constant 0 : i32
    %2 = arith.cmpi ne, %1, %c0_i32_0 : i32
    scf.if %2 {
      %cst_9 = arith.constant 0.000000e+00 : f32
      %9 = vector.broadcast %cst_9 : f32 to vector<1x2x64xf32>
      %c0_10 = arith.constant 0 : index
      %c0_11 = arith.constant 0 : index
      %c0_12 = arith.constant 0 : index
      %10 = vector.load %arg4[%c0_10, %c0_11, %c0_12] : memref<1x2x64xf32, #tpu.memory_space<vmem>>, vector<1x2x64xf32>
      tpu.vector_store %arg4[%c0_10, %c0_11, %c0_12], %9 {strides = array<i32>} : memref<1x2x64xf32, #tpu.memory_space<vmem>>, vector<1x2x64xf32>,
    } else {
    }
    %c0 = arith.constant 0 : index
    %c0_1 = arith.constant 0 : index
    %c0_2 = arith.constant 0 : index
    %3 = vector.load %arg3[%c0, %c0_1, %c0_2] : memref<2x64x256xf32, #tpu.memory_space<vmem>>, vector<2x64x256xf32>
    %c0_3 = arith.constant 0 : index
    %c0_4 = arith.constant 0 : index
    %c0_5 = arith.constant 0 : index
    %4 = vector.load %arg4[%c0_3, %c0_4, %c0_5] : memref<1x2x64xf32, #tpu.memory_space<vmem>>, vector<1x2x64xf32>
    %cst = arith.constant dense<0.000000e+00> : vector<2x64xf32>
    %5 = vector.multi_reduction <add>, %3, %cst [2] : vector<2x64x256xf32> to vector<2x64xf32>
    %6 = vector.shape_cast %5 : vector<2x64xf32> to vector<1x2x64xf32>
    %7 = arith.addf %4, %6 : vector<1x2x64xf32>
    %c0_6 = arith.constant 0 : index
    %c0_7 = arith.constant 0 : index
    %c0_8 = arith.constant 0 : index
    %8 = vector.load %arg4[%c0_6, %c0_7, %c0_8] : memref<1x2x64xf32, #tpu.memory_space<vmem>>, vector<1x2x64xf32>
    tpu.vector_store %arg4[%c0_6, %c0_7, %c0_8], %7 {strides = array<i32>} : memref<1x2x64xf32, #tpu.memory_space<vmem>>, vector<1x2x64xf32>,
    return
  }
  func.func @transform_0(%arg0: i32, %arg1: i32, %arg2: i32) -> (i32, i32, i32) {
    %c1_i32 = arith.constant 1 : i32
    %0 = arith.muli %arg0, %c1_i32 : i32
    %1 = arith.addi %0, %arg2 : i32
    %c0_i32 = arith.constant 0 : i32
    %2 = arith.minsi %1, %c0_i32 : i32
    %c0_i32_0 = arith.constant 0 : i32
    %c0_i32_1 = arith.constant 0 : i32
    return %c0_i32_0, %arg1, %2 : i32, i32, i32
  }
  func.func @transform_1(%arg0: i32, %arg1: i32, %arg2: i32) -> (i32, i32, i32) {
    %c0_i32 = arith.constant 0 : i32
    %c0_i32_0 = arith.constant 0 : i32
    return %arg0, %c0_i32, %arg1 : i32, i32, i32
  }
}

</mosaic_0001>

<bundles_post_ra>
// kernel: channel_attention.2
= control target key start
LH: loop header
LB: loop body
LE: loop exit
PB: predicated region body
PF: predicated region fallthrough
CT: control target
= control target key end

     0   :  { %vm44_vm0 = vcmask 517120   ;;  %v254_v48 = vmov 0.0   ;;  %v143_v53 = vlaneseq  ;;  %vm154_vm1 = vcmask 130112   ;;  %s382_s0 = inlined_call_operand.vmem [shape: f32[2,64,256], index: 0, kind: input, shape index: {}]   ;;  %s383_s1 = inlined_call_operand.vmem [shape: f32[1,2,64], index: 1, kind: output, shape index: {}]  }
   0x1   :  { %v62_v0 = vld [vmem:[%s382_s0 + $0x80] sm:$0xff]  ;;  %v63_v1 = vld [vmem:[%s382_s0 + $0x88] sm:$0xff]  ;;  %v64_v5 = vld [vmem:[%s382_s0 + $0x90] sm:$0xff]  ;;  %45 = vst.msk [vmem:[%s383_s1] sm:$0x3] %vm44_vm0, %v254_v48  ;;  %vm161_vm2 = vcmask 195712  }
   0x2   :  { %v46_v2 = vld [vmem:[%s382_s0] sm:$0xff]  ;;  %v103_v3 = vadd.f32 %v63_v1, %v62_v0  ;;  %v47_v4 = vld [vmem:[%s382_s0 + $0x8] sm:$0xff]  ;;  %v65_v6 = vld [vmem:[%s382_s0 + $0x98] sm:$0xff]  ;;  %v144_v56 = vand.u32 127, %v143_v53  ;;  %v146_v61 = vshrl.u32 %v143_v53, 7  ;;  %vm168_vm3 = vcmask 261312  }
   0x3   :  { %v79_v7 = vadd.f32 %v47_v4, %v46_v2  ;;  %v48_v8 = vld [vmem:[%s382_s0 + $0x10] sm:$0xff]  ;;  %v49_v9 = vld [vmem:[%s382_s0 + $0x18] sm:$0xff]  ;;  %v106_v10 = vadd.f32 %v65_v6, %v64_v5  ;;  %v66_v12 = vld [vmem:[%s382_s0 + $0xa0] sm:$0xff]  ;;  %vm175_vm4 = vcmask 326912   ;;  %vm182_vm5 = vcmask 392512  }
   0x4   :  { %104 = vadd.xlane.f32.xlu1 %v103_v3  ;;  %v82_v11 = vadd.f32 %v49_v9, %v48_v8  ;;  %v67_v13 = vld [vmem:[%s382_s0 + $0xa8] sm:$0xff]  ;;  %v50_v14 = vld [vmem:[%s382_s0 + $0x20] sm:$0xff]  ;;  %v68_v18 = vld [vmem:[%s382_s0 + $0xb0] sm:$0xff]  ;;  %v149_v58 = vadd.s32 4294967288, %v144_v56  ;;  %v156_v60 = vadd.s32 4294967280, %v144_v56  ;;  %v163_v62 = vadd.s32 4294967272, %v144_v56 }
   0x5   :  { %80 = vadd.xlane.f32.xlu0 %v79_v7  ;;  %v51_v15 = vld [vmem:[%s382_s0 + $0x28] sm:$0xff]  ;;  %v109_v16 = vadd.f32 %v67_v13, %v66_v12  ;;  %v69_v19 = vld [vmem:[%s382_s0 + $0xb8] sm:$0xff]  ;;  %v52_v20 = vld [vmem:[%s382_s0 + $0x30] sm:$0xff]  ;;  %v170_v63 = vadd.s32 4294967264, %v144_v56  ;;  %v177_v3 = vadd.s32 4294967256, %v144_v56  ;;  %v184_v5 = vadd.s32 4294967248, %v144_v56 }
   0x6   :  { %v85_v17 = vadd.f32 %v51_v15, %v50_v14  ;;  %v53_v21 = vld [vmem:[%s382_s0 + $0x38] sm:$0xff]  ;;  %v112_v22 = vadd.f32 %v69_v19, %v68_v18  ;;  %v70_v24 = vld [vmem:[%s382_s0 + $0xc0] sm:$0xff]  ;;  %v71_v25 = vld [vmem:[%s382_s0 + $0xc8] sm:$0xff]  ;;  %v152_v1 = vsub.s32 %v149_v58, %v146_v61  ;;  %v159_v4 = vsub.s32 %v156_v60, %v146_v61 }
   0x7   :  { %v88_v23 = vadd.f32 %v53_v21, %v52_v20  ;;  %v54_v26 = vld [vmem:[%s382_s0 + $0x40] sm:$0xff]  ;;  %v55_v27 = vld [vmem:[%s382_s0 + $0x48] sm:$0xff]  ;;  %v115_v28 = vadd.f32 %v71_v25, %v70_v24  ;;  %v72_v30 = vld [vmem:[%s382_s0 + $0xd0] sm:$0xff]  ;;  %v147_v6 = vsub.s32 %v144_v56, %v146_v61  ;;  %v166_v7 = vsub.s32 %v163_v62, %v146_v61 }
   0x8   :  { %107 = vadd.xlane.f32.xlu1 %v106_v10  ;;  %v91_v29 = vadd.f32 %v55_v27, %v54_v26  ;;  %v73_v31 = vld [vmem:[%s382_s0 + $0xd8] sm:$0xff]  ;;  %v56_v32 = vld [vmem:[%s382_s0 + $0x50] sm:$0xff]  ;;  %v74_v36 = vld [vmem:[%s382_s0 + $0xe0] sm:$0xff]  ;;  %v173_v8 = vsub.s32 %v170_v63, %v146_v61  ;;  %v191_v13 = vadd.s32 4294967240, %v144_v56  ;;  %vm189_vm6 = vcmask 458112  }
   0x9   :  { %83 = vadd.xlane.f32.xlu0 %v82_v11  ;;  %v57_v33 = vld [vmem:[%s382_s0 + $0x58] sm:$0xff]  ;;  %v118_v34 = vadd.f32 %v73_v31, %v72_v30  ;;  %v75_v37 = vld [vmem:[%s382_s0 + $0xe8] sm:$0xff]  ;;  %v58_v38 = vld [vmem:[%s382_s0 + $0x60] sm:$0xff]  ;;  %v180_v11 = vsub.s32 %v177_v3, %v146_v61  ;;  %vm196_vm7 = vcmask 523712   ;;  %vm237_vm8 = vcmask 1041409  }
   0xa   :  { %v94_v35 = vadd.f32 %v57_v33, %v56_v32  ;;  %v59_v39 = vld [vmem:[%s382_s0 + $0x68] sm:$0xff]  ;;  %v121_v40 = vadd.f32 %v75_v37, %v74_v36  ;;  %v76_v42 = vld [vmem:[%s382_s0 + $0xf0] sm:$0xff]  ;;  %v77_v43 = vld [vmem:[%s382_s0 + $0xf8] sm:$0xff] }
   0xb   :  { %v97_v41 = vadd.f32 %v59_v39, %v58_v38  ;;  %v60_v44 = vld [vmem:[%s382_s0 + $0x70] sm:$0xff]  ;;  %v61_v45 = vld [vmem:[%s382_s0 + $0x78] sm:$0xff]  ;;  %v124_v46 = vadd.f32 %v77_v43, %v76_v42  ;;  %v78_v48 = vld [vmem:[%s383_s1] sm:$0x3] }
   0xc   :  { %110 = vadd.xlane.f32.xlu1 %v109_v16  ;;  %v100_v47 = vadd.f32 %v61_v45, %v60_v44  ;;  %v187_v16 = vsub.s32 %v184_v5, %v146_v61 }
   0xd   :  { %86 = vadd.xlane.f32.xlu0 %v85_v17 }
  0x10   :  { %113 = vadd.xlane.f32.xlu1 %v112_v22 }
  0x11   :  { %89 = vadd.xlane.f32.xlu0 %v88_v23 }
  0x14   :  { %116 = vadd.xlane.f32.xlu1 %v115_v28  ;;  %v194_v28 = vsub.s32 %v191_v13, %v146_v61 }
  0x15   :  { %92 = vadd.xlane.f32.xlu0 %v91_v29 }
  0x18   :  { %119 = vadd.xlane.f32.xlu1 %v118_v34 }
  0x19   :  { %95 = vadd.xlane.f32.xlu0 %v94_v35 }
  0x1c   :  { %122 = vadd.xlane.f32.xlu1 %v121_v40 }
  0x1d   :  { %98 = vadd.xlane.f32.xlu0 %v97_v41 }
  0x20   :  { %125 = vadd.xlane.f32.xlu1 %v124_v46 }
  0x21   :  { %101 = vadd.xlane.f32.xlu0 %v100_v47 }
  0x91   :  { %v105_v49 = vpop.xlane.xlu1 %104 }
  0x92   :  { %v81_v50 = vpop.xlane.xlu0 %80  ;;  %v201_v17 = vrot.slane %v105_v49, %v147_v6 }
  0x93   :  { %v148_v20 = vrot.slane %v81_v50, %v147_v6 }
  0x95   :  { %v108_v51 = vpop.xlane.xlu1 %107 }
  0x96   :  { %v84_v52 = vpop.xlane.xlu0 %83  ;;  %v205_v10 = vrot.slane %v108_v51, %v152_v1 }
  0x97   :  { %v153_v14 = vrot.slane %v84_v52, %v152_v1 }
  0x98   :  { %v206_v24 = vsel %vm154_vm1, %v205_v10, %v201_v17 }
  0x99   :  { %v111_v54 = vpop.xlane.xlu1 %110  ;;  %v155_v29 = vsel %vm154_vm1, %v153_v14, %v148_v20 }
  0x9a   :  { %v87_v55 = vpop.xlane.xlu0 %86  ;;  %v210_v15 = vrot.slane %v111_v54, %v159_v4 }
  0x9b   :  { %v160_v18 = vrot.slane %v87_v55, %v159_v4 }
  0x9c   :  { %v211_v30 = vsel %vm161_vm2, %v210_v15, %v206_v24 }
  0x9d   :  { %v114_v57 = vpop.xlane.xlu1 %113  ;;  %v162_v33 = vsel %vm161_vm2, %v160_v18, %v155_v29 }
  0x9e   :  { %v90_v59 = vpop.xlane.xlu0 %89  ;;  %v215_v19 = vrot.slane %v114_v57, %v166_v7 }
  0x9f   :  { %v167_v21 = vrot.slane %v90_v59, %v166_v7 }
  0xa0   :  { %v216_v34 = vsel %vm168_vm3, %v215_v19, %v211_v30 }
  0xa1   :  { %v117_v0 = vpop.xlane.xlu1 %116  ;;  %v169_v36 = vsel %vm168_vm3, %v167_v21, %v162_v33 }
  0xa2   :  { %v93_v2 = vpop.xlane.xlu0 %92  ;;  %v220_v22 = vrot.slane %v117_v0, %v173_v8 }
  0xa3   :  { %v174_v25 = vrot.slane %v93_v2, %v173_v8 }
  0xa4   :  { %v221_v37 = vsel %vm175_vm4, %v220_v22, %v216_v34 }
  0xa5   :  { %v120_v9 = vpop.xlane.xlu1 %119  ;;  %v176_v39 = vsel %vm175_vm4, %v174_v25, %v169_v36 }
  0xa6   :  { %v96_v12 = vpop.xlane.xlu0 %95  ;;  %v225_v26 = vrot.slane %v120_v9, %v180_v11 }
  0xa7   :  { %v181_v31 = vrot.slane %v96_v12, %v180_v11 }
  0xa8   :  { %v226_v40 = vsel %vm182_vm5, %v225_v26, %v221_v37 }
  0xa9   :  { %v123_v23 = vpop.xlane.xlu1 %122  ;;  %v183_v43 = vsel %vm182_vm5, %v181_v31, %v176_v39 }
  0xaa   :  { %v99_v27 = vpop.xlane.xlu0 %98  ;;  %v230_v32 = vrot.slane %v123_v23, %v187_v16 }
  0xab   :  { %v188_v35 = vrot.slane %v99_v27, %v187_v16 }
  0xac   :  { %v231_v44 = vsel %vm189_vm6, %v230_v32, %v226_v40 }
  0xad   :  { %v126_v38 = vpop.xlane.xlu1 %125  ;;  %v190_v46 = vsel %vm189_vm6, %v188_v35, %v183_v43 }
  0xae   :  { %v235_v41 = vrot.slane %v126_v38, %v194_v28  ;;  %v102_v42 = vpop.xlane.xlu0 %101 }
  0xaf   :  { %v195_v45 = vrot.slane %v102_v42, %v194_v28 }
  0xb0   :  { %v236_v47 = vsel %vm196_vm7, %v235_v41, %v231_v44 }
  0xb1   :  { %v197_v49 = vsel %vm196_vm7, %v195_v45, %v190_v46 }
  0xb2   :  { %v238_v50 = vsel %vm237_vm8, %v236_v47, %v197_v49 }
  0xb3   :  { %v240_v51 = vadd.f32 %v238_v50, %v78_v48 }
  0xb5   :  { %242 = vst.msk [vmem:[%s383_s1] sm:$0x3] %vm44_vm0, %v240_v51 }

// kernel: channel_attention.3
= control target key start
LH: loop header
LB: loop body
LE: loop exit
PB: predicated region body
PF: predicated region fallthrough
CT: control target
= control target key end

     0   :  { %v562_v0 = vmov 0.0|0.0   ;;  %vm563_vm0 = vmmov 0   ;;  %v564_v4 = vmov 0.0   ;;  %vm50_vm1 = vcmask 523264   ;;  %s769_s1 = inlined_call_operand.vmem [shape: f32[64,4], index: 1, kind: input, shape index: {}]   ;;  %s770_s0 = inlined_call_operand.vmem [shape: f32[1,2,64], index: 0, kind: input, shape index: {}]   ;;  %s771_s3 = inlined_call_operand.vmem [shape: f32[4,4], index: 3, kind: input, shape index: {}]   ;;  %s772_s2 = inlined_call_operand.vmem [shape: f32[1,4], index: 2, kind: input, shape index: {}]   ;;  %s773_s5 = inlined_call_operand.vmem [shape: f32[4,4], index: 5, kind: input, shape index: {}]   ;;  %s774_s4 = inlined_call_operand.vmem [shape: f32[1,4], index: 4, kind: input, shape index: {}]   ;;  %s775_s7 = inlined_call_operand.vmem [shape: f32[4,64], index: 7, kind: input, shape index: {}]   ;;  %s776_s6 = inlined_call_operand.vmem [shape: f32[1,4], index: 6, kind: input, shape index: {}]   ;;  %s777_s8 = inlined_call_operand.vmem [shape: f32[1,64], index: 8, kind: input, shape index: {}]   ;;  %s778_s9 = inlined_call_operand.vmem [shape: f32[2,64,256], index: 9, kind: output, shape index: {}]  }
   0x1   :  { %547 = vmatprep.subr.bf16.mxu0 %v562_v0  ;;  %v35_v1 = vld [vmem:[%s769_s1] sm:$0xff]  ;;  %v36_v2 = vld [vmem:[%s769_s1 + $0x8] sm:$0xff]  ;;  %v37_v3 = vld [vmem:[%s769_s1 + $0x10] sm:$0xff]  ;;  %529 = vmatprep.mubr.msk.f32.mxu0 %vm563_vm0, %v564_v4  ;;  %vm137_vm2 = vcmask 1043456   ;;  %vm133_vm3 = vcmask 31744   ;;  %v381_v34 = vlaneseq }
   0x2   :  { %v548_v5 = vpack.c.bf16 %v36_v2, %v35_v1  ;;  %v38_v6 = vld [vmem:[%s769_s1 + $0x18] sm:$0xff]  ;;  %532 = vmatprep.subr.mxu1 %v564_v4  ;;  %534 = vmatprep.mubr.msk.f32.mxu1 %vm563_vm0, %v564_v4  ;;  %v39_v8 = vld [vmem:[%s769_s1 + $0x20] sm:$0xff]  ;;  %v40_v9 = vld [vmem:[%s769_s1 + $0x28] sm:$0xff] }
   0x3   :  { %v551_v7 = vpack.c.bf16 %v38_v6, %v37_v3  ;;  %v554_v10 = vpack.c.bf16 %v40_v9, %v39_v8  ;;  %v41_v11 = vld [vmem:[%s769_s1 + $0x30] sm:$0xff]  ;;  %v42_v12 = vld [vmem:[%s769_s1 + $0x38] sm:$0xff]  ;;  %v32_v14 = vld [vmem:[%s770_s0] sm:$0x3]  ;;  %v382_v35 = vshrl.u32 %v381_v34, 7 }
   0x4   :  { %549 = vmatpush3.bf16.msra.mxu0 %v548_v5  ;;  %v557_v13 = vpack.c.bf16 %v42_v12, %v41_v11  ;;  %v34_v15 = vmul.f32 0.00390625, %v32_v14  ;;  %v125_v16 = vld [vmem:[%s771_s3] sm:$0xf] }
   0x5   :  { %550 = vmatprep.subr.bf16.mxu0 %v562_v0  ;;  %533 = vmatpush3.msk.msra.mxu1 %vm137_vm2, %v125_v16  ;;  %v487_v17 = vld [vmem:[%s772_s2] ss:$0 sm:$0xff]  ;;  %v383_v37 = vsub.s32 0, %v382_v35  ;;  %v418_v42 = vsub.s32 1, %v382_v35 }
   0x6   :  { %537 = vmatprep.subr.mxu1 %v564_v4  ;;  %v212_v22 = vld [vmem:[%s773_s5] sm:$0xf] }
   0x7   :  { %v489_v23 = vld [vmem:[%s774_s4] ss:$0 sm:$0xff] }
   0x8   :  { %552 = vmatpush3.bf16.msra.mxu0 %v551_v7  ;;  %v297_v28 = vld [vmem:[%s775_s7] sm:$0xf] }
   0x9   :  { %553 = vmatprep.subr.bf16.mxu0 %v562_v0  ;;  %v492_v29 = vld [vmem:[%s776_s6] ss:$0 sm:$0xff] }
   0xa   :  { %v495_v36 = vld [vmem:[%s777_s8] ss:$0 sm:$0xff] }
   0xc   :  { %555 = vmatpush3.bf16.msra.mxu0 %v554_v10 }
   0xd   :  { %556 = vmatprep.subr.bf16.mxu0 %v562_v0 }
  0x10   :  { %558 = vmatpush3.bf16.msra.mxu0 %v557_v13 }
  0x13   :  { %530 = vmatmul.mubr.msk.f32.vlgmr.msra.gmra.mrb[0].mxu0 %vm50_vm1, %v34_v15 }
  0xe6   :  { %v120_v18 = vpop.f32.mrb[0].mxu0 }
  0xe7   :  { %v121_v19 = vadd.f32 %v487_v17, %v120_v18  ;;  %v531_v20 = vpop.f32.mrb[1].mxu0 }
  0xe9   :  { %v124_v21 = vmax.f32 %v121_v19, 0.0 }
  0xeb   :  { %535 = vmatmul.mubr.msk.f32.vlgmr.msra.gmra.mrb[0].mxu1 %vm133_vm3, %v124_v21 }
  0xec   :  { %539 = vmatprep.mubr.msk.f32.mxu1 %vm563_vm0, %v564_v4  ;;  %538 = vmatpush3.msk.msra.mxu1 %vm137_vm2, %v212_v22 }
  0xed   :  { %542 = vmatprep.subr.mxu1 %v564_v4 }
 0x1be   :  { %v207_v24 = vpop.f32.mrb[0].mxu1 }
 0x1bf   :  { %v208_v25 = vadd.f32 %v489_v23, %v207_v24  ;;  %v536_v26 = vpop.f32.mrb[1].mxu1 }
 0x1c1   :  { %v211_v27 = vmax.f32 %v208_v25, 0.0 }
 0x1c3   :  { %540 = vmatmul.mubr.msk.f32.vlgmr.msra.gmra.mrb[2].mxu1 %vm133_vm3, %v211_v27 }
 0x1c4   :  { %544 = vmatprep.mubr.msk.f32.mxu1 %vm563_vm0, %v564_v4  ;;  %543 = vmatpush3.msk.msra.mxu1 %vm137_vm2, %v297_v28 }
 0x296   :  { %v292_v30 = vpop.f32.mrb[2].mxu1 }
 0x297   :  { %v293_v31 = vadd.f32 %v492_v29, %v292_v30  ;;  %v541_v32 = vpop.f32.mrb[3].mxu1 }
 0x299   :  { %v296_v33 = vmax.f32 %v293_v31, 0.0 }
 0x29b   :  { %545 = vmatmul.mubr.msk.f32.vlgmr.msra.gmra.mrb[4].mxu1 %vm133_vm3, %v296_v33 }
 0x36e   :  { %v377_v38 = vpop.f32.mrb[4].mxu1 }
 0x36f   :  { %v378_v39 = vadd.f32 %v495_v36, %v377_v38  ;;  %v546_v40 = vpop.f32.mrb[5].mxu1 }
 0x371   :  { %v384_v41 = vrot.slane %v378_v39, %v383_v37  ;;  %v419_v43 = vrot.slane %v378_v39, %v418_v42 }
 0x373   :  { %394 = vbcast.lane.b32.xlu1 %v384_v41, 272  ;;  %386 = vbcast.lane.b32.xlu0 %v384_v41, 256 }
 0x377   :  { %398 = vbcast.lane.b32.xlu1 %v384_v41, 280  ;;  %390 = vbcast.lane.b32.xlu0 %v384_v41, 264 }
 0x37b   :  { %406 = vbcast.lane.b32.xlu1 %v384_v41, 296  ;;  %402 = vbcast.lane.b32.xlu0 %v384_v41, 288 }
 0x37f   :  { %414 = vbcast.lane.b32.xlu1 %v384_v41, 312  ;;  %410 = vbcast.lane.b32.xlu0 %v384_v41, 304 }
 0x383   :  { %425 = vbcast.lane.b32.xlu1 %v419_v43, 264  ;;  %421 = vbcast.lane.b32.xlu0 %v419_v43, 256 }
 0x387   :  { %433 = vbcast.lane.b32.xlu1 %v419_v43, 280  ;;  %429 = vbcast.lane.b32.xlu0 %v419_v43, 272 }
 0x38b   :  { %441 = vbcast.lane.b32.xlu1 %v419_v43, 296  ;;  %437 = vbcast.lane.b32.xlu0 %v419_v43, 288 }
 0x38f   :  { %449 = vbcast.lane.b32.xlu1 %v419_v43, 312  ;;  %445 = vbcast.lane.b32.xlu0 %v419_v43, 304 }
 0x3e5   :  { %v395_v44 = vpop.permute.xlu1 %394  ;;  %v387_v45 = vpop.permute.xlu0 %386 }
 0x3e6   :  { %455 = vst [vmem:[%s778_s9 + $0x20] sm:$0xff] %v395_v44  ;;  %456 = vst [vmem:[%s778_s9 + $0x28] sm:$0xff] %v395_v44 }
 0x3e7   :  { %451 = vst [vmem:[%s778_s9] sm:$0xff] %v387_v45  ;;  %452 = vst [vmem:[%s778_s9 + $0x8] sm:$0xff] %v387_v45 }
 0x3e9   :  { %v399_v46 = vpop.permute.xlu1 %398  ;;  %v391_v47 = vpop.permute.xlu0 %390 }
 0x3ea   :  { %457 = vst [vmem:[%s778_s9 + $0x30] sm:$0xff] %v399_v46  ;;  %458 = vst [vmem:[%s778_s9 + $0x38] sm:$0xff] %v399_v46 }
 0x3eb   :  { %453 = vst [vmem:[%s778_s9 + $0x10] sm:$0xff] %v391_v47  ;;  %454 = vst [vmem:[%s778_s9 + $0x18] sm:$0xff] %v391_v47 }
 0x3ed   :  { %v407_v48 = vpop.permute.xlu1 %406  ;;  %v403_v49 = vpop.permute.xlu0 %402 }
 0x3ee   :  { %461 = vst [vmem:[%s778_s9 + $0x50] sm:$0xff] %v407_v48  ;;  %462 = vst [vmem:[%s778_s9 + $0x58] sm:$0xff] %v407_v48 }
 0x3ef   :  { %459 = vst [vmem:[%s778_s9 + $0x40] sm:$0xff] %v403_v49  ;;  %460 = vst [vmem:[%s778_s9 + $0x48] sm:$0xff] %v403_v49 }
 0x3f1   :  { %v415_v50 = vpop.permute.xlu1 %414  ;;  %v411_v51 = vpop.permute.xlu0 %410 }
 0x3f2   :  { %465 = vst [vmem:[%s778_s9 + $0x70] sm:$0xff] %v415_v50  ;;  %466 = vst [vmem:[%s778_s9 + $0x78] sm:$0xff] %v415_v50 }
 0x3f3   :  { %463 = vst [vmem:[%s778_s9 + $0x60] sm:$0xff] %v411_v51  ;;  %464 = vst [vmem:[%s778_s9 + $0x68] sm:$0xff] %v411_v51 }
 0x3f5   :  { %v426_v52 = vpop.permute.xlu1 %425  ;;  %v422_v53 = vpop.permute.xlu0 %421 }
 0x3f6   :  { %469 = vst [vmem:[%s778_s9 + $0x90] sm:$0xff] %v426_v52  ;;  %470 = vst [vmem:[%s778_s9 + $0x98] sm:$0xff] %v426_v52 }
 0x3f7   :  { %467 = vst [vmem:[%s778_s9 + $0x80] sm:$0xff] %v422_v53  ;;  %468 = vst [vmem:[%s778_s9 + $0x88] sm:$0xff] %v422_v53 }
 0x3f9   :  { %v434_v54 = vpop.permute.xlu1 %433  ;;  %v430_v55 = vpop.permute.xlu0 %429 }
 0x3fa   :  { %473 = vst [vmem:[%s778_s9 + $0xb0] sm:$0xff] %v434_v54  ;;  %474 = vst [vmem:[%s778_s9 + $0xb8] sm:$0xff] %v434_v54 }
 0x3fb   :  { %471 = vst [vmem:[%s778_s9 + $0xa0] sm:$0xff] %v430_v55  ;;  %472 = vst [vmem:[%s778_s9 + $0xa8] sm:$0xff] %v430_v55 }
 0x3fd   :  { %v442_v56 = vpop.permute.xlu1 %441  ;;  %v438_v57 = vpop.permute.xlu0 %437 }
 0x3fe   :  { %477 = vst [vmem:[%s778_s9 + $0xd0] sm:$0xff] %v442_v56  ;;  %478 = vst [vmem:[%s778_s9 + $0xd8] sm:$0xff] %v442_v56 }
 0x3ff   :  { %475 = vst [vmem:[%s778_s9 + $0xc0] sm:$0xff] %v438_v57  ;;  %476 = vst [vmem:[%s778_s9 + $0xc8] sm:$0xff] %v438_v57 }
 0x401   :  { %v450_v58 = vpop.permute.xlu1 %449  ;;  %v446_v59 = vpop.permute.xlu0 %445 }
 0x402   :  { %481 = vst [vmem:[%s778_s9 + $0xf0] sm:$0xff] %v450_v58  ;;  %482 = vst [vmem:[%s778_s9 + $0xf8] sm:$0xff] %v450_v58 }
 0x403   :  { %479 = vst [vmem:[%s778_s9 + $0xe0] sm:$0xff] %v446_v59  ;;  %480 = vst [vmem:[%s778_s9 + $0xe8] sm:$0xff] %v446_v59 }

</bundles_post_ra>
